<compile_context>
chip_gen: v6e
topology: v6e:2x2x1
jax: 0.10.0
libtpu: 0.0.40
codegen_flags: <defaults>
</compile_context>

<pallas_src>
import math

import jax
import jax.numpy as jnp
from jax.experimental import pallas as pl
from jax.experimental.pallas import tpu as pltpu

# ------------------------------ configuration -------------------------------
IN_SIZE = 64          # features of the input x
HIDDEN_SIZE = 256     # module-level hidden_size in the reference script
OUT_SIZE = 128        # out_size chosen lane-dense (multiple of 128)
BATCH = 16            # example batch (any leading * in the PyTorch spec)
MAX_BLOCK_ROWS = 512  # row tile cap for large batches


# --------------------------------- kernel -----------------------------------
def mlp_kernel(x_ref, w1_ref, b1_ref, w2_ref, b2_ref, w3_ref, b3_ref, o_ref):
    """Fused fc1 -> relu -> fc2 -> relu -> fc3 on one row tile.

    Weights arrive pre-transposed [in, out] in bf16; biases [1, out] in f32.
    MXU matmuls accumulate in f32; bias/ReLU run in f32 on the VPU; the cast
    to bf16 happens only at each matmul boundary (keeps v5e's VPU happy).
    """
    x = x_ref[...]                                                    # f32 [bm, IN]

    h = jnp.dot(x.astype(jnp.bfloat16), w1_ref[...],
                preferred_element_type=jnp.float32)                   # [bm, H]
    h = jnp.maximum(h + b1_ref[...], 0.0)

    h = jnp.dot(h.astype(jnp.bfloat16), w2_ref[...],
                preferred_element_type=jnp.float32)                   # [bm, H]
    h = jnp.maximum(h + b2_ref[...], 0.0)

    o_ref[...] = jnp.dot(h.astype(jnp.bfloat16), w3_ref[...],
                         preferred_element_type=jnp.float32) + b3_ref[...]


# ------------------------------ host wrapper ---------------------------------
def mlp_forward(x, params, *, max_block_rows=MAX_BLOCK_ROWS):
    """x: [*, in_size] float32 -> [*, out_size] float32."""
    *lead, in_size = x.shape
    n = int(math.prod(lead)) if lead else 1
    x2 = x.reshape(n, in_size)

    hidden = params['w1'].shape[1]
    out_size = params['w3'].shape[1]

    # Row tile: whole (sublane-padded) batch in one grid step when it fits,
    # otherwise 512-row tiles.  Padding rows are sliced off afterwards.
    if n <= max_block_rows:
        block_rows = max(8, pl.cdiv(n, 8) * 8)
    else:
        block_rows = max_block_rows
    n_pad = pl.cdiv(n, block_rows) * block_rows
    if n_pad != n:
        x2 = jnp.pad(x2, ((0, n_pad - n), (0, 0)))

    grid = (n_pad // block_rows,)

    def row_map(i):
        return (i, 0)

    def whole(_i):
        return (0, 0)

    out = pl.pallas_call(
        mlp_kernel,
        out_shape=jax.ShapeDtypeStruct((n_pad, out_size), jnp.float32),
        grid_spec=pltpu.PrefetchScalarGridSpec(
            num_scalar_prefetch=0,
            grid=grid,
            in_specs=[
                pl.BlockSpec((block_rows, in_size), row_map),   # x row tile (f32)
                pl.BlockSpec((in_size, hidden), whole),         # w1 [in, H]  bf16
                pl.BlockSpec((1, hidden), whole),               # b1          f32
                pl.BlockSpec((hidden, hidden), whole),          # w2 [H, H]   bf16
                pl.BlockSpec((1, hidden), whole),               # b2          f32
                pl.BlockSpec((hidden, out_size), whole),        # w3 [H, out] bf16
                pl.BlockSpec((1, out_size), whole),             # b3          f32
            ],
            out_specs=pl.BlockSpec((block_rows, out_size), row_map),
        ),
        compiler_params=pltpu.CompilerParams(
            # Weight-DMA-bound at these shapes: do NOT shard the grid across
            # v7x's two TensorCores (that would duplicate the weight DMA).
            dimension_semantics=("arbitrary",),
        ),
    )(x2, params['w1'], params['b1'], params['w2'], params['b2'],
      params['w3'], params['b3'])

    out = out[:n]
    return out.reshape(*lead, out_size) if lead else out.reshape(out_size)


# ------------------------------- parameters ----------------------------------
def init_params(key, in_size, hidden, out_size):
    """PyTorch nn.Linear-style init (U(-1/sqrt(fan_in), +1/sqrt(fan_in))),
    weights pre-transposed once on the host to [in, out], kept in f32."""
    ks = jax.random.split(key, 6)

    def linear(kw, kb, fan_in, fan_out):
        bound = 1.0 / jnp.sqrt(jnp.float32(fan_in))
        w = jax.random.uniform(kw, (fan_out, fan_in), jnp.float32, -bound, bound)
        b = jax.random.uniform(kb, (fan_out,), jnp.float32, -bound, bound)
        return w.T, b.reshape(1, fan_out)          # [in, out], [1, out]

    w1, b1 = linear(ks[0], ks[1], in_size, hidden)       # fc1
    w2, b2 = linear(ks[2], ks[3], hidden, hidden)        # fc2
    w3, b3 = linear(ks[4], ks[5], hidden, out_size)      # fc3
    # TODO(synk): fc21 / fc22 are defined in the PyTorch module but unused in
    #             forward(); they are intentionally not created here.
    return {'w1': w1, 'b1': b1, 'w2': w2, 'b2': b2, 'w3': w3, 'b3': b3}


def quantize_params(p):
    """One-time host-side cast of weights to bf16 (biases stay f32)."""
    return {k: (v.astype(jnp.bfloat16) if k.startswith('w') else v)
            for k, v in p.items()}


# ------------------------------- references ----------------------------------
def mlp_reference_f32(x, p):
    """Pure-f32 reference (original module semantics)."""
    h = jnp.maximum(x @ p['w1'] + p['b1'], 0.0)
    h = jnp.maximum(h @ p['w2'] + p['b2'], 0.0)
    return h @ p['w3'] + p['b3']


def mlp_reference_quantized(x, qp):
    """Reference emulating the kernel's bf16-weight / bf16-activation matmuls."""
    h = jnp.dot(x.astype(jnp.bfloat16), qp['w1'],
                preferred_element_type=jnp.float32)
    h = jnp.maximum(h + qp['b1'], 0.0)
    h = jnp.dot(h.astype(jnp.bfloat16), qp['w2'],
                preferred_element_type=jnp.float32)
    h = jnp.maximum(h + qp['b2'], 0.0)
    return jnp.dot(h.astype(jnp.bfloat16), qp['w3'],
                   preferred_element_type=jnp.float32) + qp['b3']


# ----------------------------------- main -------------------------------------
if __name__ == "__main__":
    key = jax.random.PRNGKey(0)
    k_x, k_p = jax.random.split(key, 2)

    x = jax.random.normal(k_x, (BATCH, IN_SIZE), jnp.float32)
    params_f32 = init_params(k_p, IN_SIZE, HIDDEN_SIZE, OUT_SIZE)
    params_q = quantize_params(params_f32)

    out = mlp_forward(x, params_q)
    out = jax.block_until_ready(out)

    assert out.shape == (BATCH, OUT_SIZE)
    assert bool(jnp.all(jnp.isfinite(out)))

    # Tight check against a reference that performs the same bf16 quantization.
    ref_q = mlp_reference_quantized(x, params_q)
    assert bool(jnp.allclose(out, ref_q, atol=2e-3, rtol=2e-3)), \
        float(jnp.max(jnp.abs(out - ref_q)))

    # Loose check against the full-f32 module semantics (bf16 weight error).
    ref_f32 = mlp_reference_f32(x, params_f32)
    assert bool(jnp.allclose(out, ref_f32, atol=5e-2, rtol=5e-2)), \
        float(jnp.max(jnp.abs(out - ref_f32)))

    print("KERNEL_OK")
</pallas_src>

<mosaic_0001>
module attributes {stable_mosaic.version = 11 : i64} {
  func.func @mlp_kernel(%arg0: i32, %arg1: memref<16x64xf32, #tpu.memory_space<vmem>>, %arg2: memref<64x256xbf16, #tpu.memory_space<vmem>>, %arg3: memref<1x256xf32, #tpu.memory_space<vmem>>, %arg4: memref<256x256xbf16, #tpu.memory_space<vmem>>, %arg5: memref<1x256xf32, #tpu.memory_space<vmem>>, %arg6: memref<256x128xbf16, #tpu.memory_space<vmem>>, %arg7: memref<1x128xf32, #tpu.memory_space<vmem>>, %arg8: memref<16x128xf32, #tpu.memory_space<vmem>>) attributes {dimension_semantics = [#tpu.dimension_semantics<arbitrary>], iteration_bounds = array<i64: 1>, scalar_prefetch = 0 : i64, scratch_operands = 0 : i64, tpu.core_type = #tpu.core_type<tc>, window_params = [{transform_indices = @transform_0, window_bounds = array<i64: 16, 64>}, {pipeline_mode = #tpu.pipeline_mode<synchronous>, transform_indices = @transform_1, window_bounds = array<i64: 64, 256>}, {pipeline_mode = #tpu.pipeline_mode<synchronous>, transform_indices = @transform_2, window_bounds = array<i64: 1, 256>}, {pipeline_mode = #tpu.pipeline_mode<synchronous>, transform_indices = @transform_3, window_bounds = array<i64: 256, 256>}, {pipeline_mode = #tpu.pipeline_mode<synchronous>, transform_indices = @transform_4, window_bounds = array<i64: 1, 256>}, {pipeline_mode = #tpu.pipeline_mode<synchronous>, transform_indices = @transform_5, window_bounds = array<i64: 256, 128>}, {pipeline_mode = #tpu.pipeline_mode<synchronous>, transform_indices = @transform_6, window_bounds = array<i64: 1, 128>}, {transform_indices = @transform_7, window_bounds = array<i64: 16, 128>}]} {
    %c0 = arith.constant 0 : index
    %c0_0 = arith.constant 0 : index
    %0 = vector.load %arg1[%c0, %c0_0] : memref<16x64xf32, #tpu.memory_space<vmem>>, vector<16x64xf32>
    %1 = arith.truncf %0 : vector<16x64xf32> to vector<16x64xbf16>
    %c0_1 = arith.constant 0 : index
    %c0_2 = arith.constant 0 : index
    %2 = vector.load %arg2[%c0_1, %c0_2] : memref<64x256xbf16, #tpu.memory_space<vmem>>, vector<64x256xbf16>
    %cst = arith.constant dense<0.000000e+00> : vector<16x256xf32>
    %3 = tpu.matmul %1, %2, %cst {dimension_numbers = #tpu.dot_dimension_numbers<[1], [0], [0], [1], [0, 0, 1, 1], [], []>} : vector<16x64xbf16>, vector<64x256xbf16>, vector<16x256xf32> -> vector<16x256xf32>
    %c0_3 = arith.constant 0 : index
    %c0_4 = arith.constant 0 : index
    %4 = vector.load %arg3[%c0_3, %c0_4] : memref<1x256xf32, #tpu.memory_space<vmem>>, vector<1x256xf32>
    %5 = vector.broadcast %4 : vector<1x256xf32> to vector<16x256xf32>
    %6 = arith.addf %3, %5 : vector<16x256xf32>
    %cst_5 = arith.constant 0.000000e+00 : f32
    %7 = vector.broadcast %cst_5 : f32 to vector<16x256xf32>
    %8 = arith.maximumf %6, %7 : vector<16x256xf32>
    %9 = arith.truncf %8 : vector<16x256xf32> to vector<16x256xbf16>
    %c0_6 = arith.constant 0 : index
    %c0_7 = arith.constant 0 : index
    %10 = vector.load %arg4[%c0_6, %c0_7] : memref<256x256xbf16, #tpu.memory_space<vmem>>, vector<256x256xbf16>
    %cst_8 = arith.constant dense<0.000000e+00> : vector<16x256xf32>
    %11 = tpu.matmul %9, %10, %cst_8 {dimension_numbers = #tpu.dot_dimension_numbers<[1], [0], [0], [1], [0, 0, 1, 1], [], []>} : vector<16x256xbf16>, vector<256x256xbf16>, vector<16x256xf32> -> vector<16x256xf32>
    %c0_9 = arith.constant 0 : index
    %c0_10 = arith.constant 0 : index
    %12 = vector.load %arg5[%c0_9, %c0_10] : memref<1x256xf32, #tpu.memory_space<vmem>>, vector<1x256xf32>
    %13 = vector.broadcast %12 : vector<1x256xf32> to vector<16x256xf32>
    %14 = arith.addf %11, %13 : vector<16x256xf32>
    %cst_11 = arith.constant 0.000000e+00 : f32
    %15 = vector.broadcast %cst_11 : f32 to vector<16x256xf32>
    %16 = arith.maximumf %14, %15 : vector<16x256xf32>
    %17 = arith.truncf %16 : vector<16x256xf32> to vector<16x256xbf16>
    %c0_12 = arith.constant 0 : index
    %c0_13 = arith.constant 0 : index
    %18 = vector.load %arg6[%c0_12, %c0_13] : memref<256x128xbf16, #tpu.memory_space<vmem>>, vector<256x128xbf16>
    %cst_14 = arith.constant dense<0.000000e+00> : vector<16x128xf32>
    %19 = tpu.matmul %17, %18, %cst_14 {dimension_numbers = #tpu.dot_dimension_numbers<[1], [0], [0], [1], [0, 0, 1, 1], [], []>} : vector<16x256xbf16>, vector<256x128xbf16>, vector<16x128xf32> -> vector<16x128xf32>
    %c0_15 = arith.constant 0 : index
    %c0_16 = arith.constant 0 : index
    %20 = vector.load %arg7[%c0_15, %c0_16] : memref<1x128xf32, #tpu.memory_space<vmem>>, vector<1x128xf32>
    %21 = vector.broadcast %20 : vector<1x128xf32> to vector<16x128xf32>
    %22 = arith.addf %19, %21 : vector<16x128xf32>
    %c0_17 = arith.constant 0 : index
    %c0_18 = arith.constant 0 : index
    %23 = vector.load %arg8[%c0_17, %c0_18] : memref<16x128xf32, #tpu.memory_space<vmem>>, vector<16x128xf32>
    tpu.vector_store %arg8[%c0_17, %c0_18], %22 {strides = array<i32>} : memref<16x128xf32, #tpu.memory_space<vmem>>, vector<16x128xf32>,
    return
  }
  func.func @transform_0(%arg0: i32) -> (i32, i32) {
    %c0_i32 = arith.constant 0 : i32
    %c0_i32_0 = arith.constant 0 : i32
    return %arg0, %c0_i32 : i32, i32
  }
  func.func @transform_1(%arg0: i32) -> (i32, i32) {
    %c0_i32 = arith.constant 0 : i32
    %c0_i32_0 = arith.constant 0 : i32
    %c0_i32_1 = arith.constant 0 : i32
    return %c0_i32, %c0_i32_0 : i32, i32
  }
  func.func @transform_2(%arg0: i32) -> (i32, i32) {
    %c0_i32 = arith.constant 0 : i32
    %c0_i32_0 = arith.constant 0 : i32
    %c0_i32_1 = arith.constant 0 : i32
    return %c0_i32, %c0_i32_0 : i32, i32
  }
  func.func @transform_3(%arg0: i32) -> (i32, i32) {
    %c0_i32 = arith.constant 0 : i32
    %c0_i32_0 = arith.constant 0 : i32
    %c0_i32_1 = arith.constant 0 : i32
    return %c0_i32, %c0_i32_0 : i32, i32
  }
  func.func @transform_4(%arg0: i32) -> (i32, i32) {
    %c0_i32 = arith.constant 0 : i32
    %c0_i32_0 = arith.constant 0 : i32
    %c0_i32_1 = arith.constant 0 : i32
    return %c0_i32, %c0_i32_0 : i32, i32
  }
  func.func @transform_5(%arg0: i32) -> (i32, i32) {
    %c0_i32 = arith.constant 0 : i32
    %c0_i32_0 = arith.constant 0 : i32
    %c0_i32_1 = arith.constant 0 : i32
    return %c0_i32, %c0_i32_0 : i32, i32
  }
  func.func @transform_6(%arg0: i32) -> (i32, i32) {
    %c0_i32 = arith.constant 0 : i32
    %c0_i32_0 = arith.constant 0 : i32
    %c0_i32_1 = arith.constant 0 : i32
    return %c0_i32, %c0_i32_0 : i32, i32
  }
  func.func @transform_7(%arg0: i32) -> (i32, i32) {
    %c0_i32 = arith.constant 0 : i32
    %c0_i32_0 = arith.constant 0 : i32
    return %arg0, %c0_i32 : i32, i32
  }
}

</mosaic_0001>

<bundles_post_ra>
// kernel: tpu_custom_call.1
= control target key start
LH: loop header
LB: loop body
LE: loop exit
PB: predicated region body
PF: predicated region fallthrough
CT: control target
= control target key end

     0   :  { %12 = vsyncpa [#allocation3], 0  ;;  %s1009_s0 = inlined_call_operand.hbm [shape: f32[16,64], index: 0, kind: input, shape index: {}]   ;;  %s1010_s1 = inlined_call_operand.hbm [shape: bf16[64,256], index: 1, kind: input, shape index: {}]   ;;  %s1011_s2 = inlined_call_operand.vmem [shape: f32[1,256], index: 2, kind: input, shape index: {}]   ;;  %s1012_s3 = inlined_call_operand.hbm [shape: bf16[256,256], index: 3, kind: input, shape index: {}]   ;;  %s1013_s4 = inlined_call_operand.vmem [shape: f32[1,256], index: 4, kind: input, shape index: {}]   ;;  %s1014_s5 = inlined_call_operand.hbm [shape: bf16[256,128], index: 5, kind: input, shape index: {}]   ;;  %s1015_s6 = inlined_call_operand.vmem [shape: f32[1,128], index: 6, kind: input, shape index: {}]   ;;  %s1016_s7 = inlined_call_operand.hbm [shape: f32[16,128], index: 7, kind: output, shape index: {}]  }
   0x1   :  { %13 = vsyncpa [#allocation6], 0 }
   0x2   :  { %14 = vsyncpa [#allocation9], 0 }
   0x3   :  { %15 = vsyncpa [#allocation4], 0  ;;  %s923_s24 = smov [#allocation5]   ;;  %s924_s26 = smov [#allocation2]  }
   0x4   :  { %s33_s25 = sshll.u32 %s923_s24, 4  ;;  %s21_s27 = sshll.u32 %s924_s26, 4  ;;  %s34_s25 = int_to_ptr.vmem [resolvable:$true] %s33_s25  ;;  %s22_s27 = int_to_ptr.vmem [resolvable:$true] %s21_s27 }
   0x5   :  { %s823_s28 = scalar_lea.vmem %s34_s25, 1024  ;;  %p828_p1 = scmp.lt.s32.totalorder %s34_s25, %s34_s25 }
   0x6   :  { %p824_p0 = scmp.ne.s32.totalorder %s34_s25, %s823_s28  ;;  %p829_p2 = scmp.lt.s32.totalorder %s823_s28, %s823_s28 }
   0x8   :  { %p830_p3 = por %p829_p2, %p828_p1 }
   0xa   :  { %p831_p4 = pnand %p830_p3, %p824_p0 }
   0xc   :  { %834 = shalt.err (!%p831_p4)
}
   0xd   :  { %s925_s29 = smov 128   ;;  %s926_s30 = smov 8  }
   0xe   :  { %39 = dma.hbm_to_vmem [thread:$0]  %s1010_s1, 1024, %s34_s25, [#allocation6], %s925_s29, %s925_s29, %s926_s30  }
   0xf   :  { %s843_s10 = scalar_lea.vmem %s22_s27, 256  ;;  %p848_p6 = scmp.lt.s32.totalorder %s22_s27, %s22_s27 }
  0x10   :  { %p844_p5 = scmp.ne.s32.totalorder %s22_s27, %s843_s10  ;;  %p849_p7 = scmp.lt.s32.totalorder %s843_s10, %s843_s10 }
  0x12   :  { %p850_p8 = por %p849_p7, %p848_p6 }
  0x14   :  { %p851_p9 = pnand %p850_p8, %p844_p5 }
  0x16   :  { %854 = shalt.err (!%p851_p9)
}
  0x17   :  { %27 = dma.hbm_to_vmem [thread:$0]  %s1009_s0, 256, %s22_s27, [#allocation3], %s925_s29, %s925_s29, %s926_s30  }
  0x18   :  { %s927_s13 = smov [#allocation7]   ;;  %s928_s15 = smov [#allocation8]  }
  0x19   :  { %s47_s14 = sshll.u32 %s927_s13, 4  ;;  %s61_s16 = sshll.u32 %s928_s15, 4  ;;  %s48_s14 = int_to_ptr.vmem [resolvable:$true] %s47_s14  ;;  %s62_s16 = int_to_ptr.vmem [resolvable:$true] %s61_s16 }
  0x1a   :  { %s863_s1 = scalar_lea.vmem %s48_s14, 4096  ;;  %p868_p11 = scmp.lt.s32.totalorder %s48_s14, %s48_s14 }
  0x1b   :  { %p864_p10 = scmp.ne.s32.totalorder %s48_s14, %s863_s1  ;;  %p869_p12 = scmp.lt.s32.totalorder %s863_s1, %s863_s1 }
  0x1d   :  { %p870_p13 = por %p869_p12, %p868_p11 }
  0x1f   :  { %p871_p0 = pnand %p870_p13, %p864_p10 }
  0x21   :  { %874 = shalt.err (!%p871_p0)
}
  0x22   :  { %53 = dma.hbm_to_vmem [thread:$0]  %s1012_s3, 4096, %s48_s14, [#allocation6], %s925_s29, %s925_s29, %s926_s30  }
  0x23   :  { %s883_s0 = scalar_lea.vmem %s62_s16, 2048  ;;  %p888_p2 = scmp.lt.s32.totalorder %s62_s16, %s62_s16 }
  0x24   :  { %p884_p1 = scmp.ne.s32.totalorder %s62_s16, %s883_s0  ;;  %p889_p3 = scmp.lt.s32.totalorder %s883_s0, %s883_s0 }
  0x26   :  { %p890_p4 = por %p889_p3, %p888_p2 }
  0x28   :  { %p891_p5 = pnand %p890_p4, %p884_p1 }
  0x2a   :  { %894 = shalt.err (!%p891_p5)
}
  0x2b   :  { %s929_s19 = smov 64   ;;  %s930_s20 = smov 4  }
  0x2c   :  { %67 = dma.hbm_to_vmem [thread:$0]  %s1014_s5, 2048, %s62_s16, [#allocation9], %s929_s19, %s929_s19, %s930_s20  }
  0x2d   :  { %915 = dma.done.wait [#allocation3], 256  }
  0x2e   :  { %916 = vsyncadd [#allocation3], 4294967040 }
  0x2f   :  { %917 = dma.done.wait [#allocation6], 5120  }
  0x30   :  { %918 = vsyncadd [#allocation6], 4294962176 }
  0x31   :  { %919 = dma.done.wait [#allocation9], 2048  }
  0x32   :  { %920 = vsyncadd [#allocation9], 4294965248  ;;  %v931_v0 = vmov 0   ;;  %v739_v1 = vld [vmem:[#allocation5 + $0x34] ss:$8 sps:$4 sm:$0xff]   ;;  %vm146_vm0 = vcmask 523264   ;;  %v96_v54 = vlaneseq }
  0x33   :  { %182 = vmatprep.mubr.bf16.mxu0 %v931_v0  ;;  %v741_v2 = vld [vmem:[#allocation5 + $0x30] ss:$8 sps:$4 sm:$0xff]   ;;  %158 = vmatprep.subr.bf16.mxu0 %v739_v1  ;;  %v742_v3 = vld [vmem:[#allocation5 + $0x24] ss:$8 sps:$4 sm:$0xff]   ;;  %v744_v4 = vld [vmem:[#allocation5 + $0x20] ss:$8 sps:$4 sm:$0xff]  }
  0x34   :  { %159 = vmatpush1.bf16.msra.mxu0 %v741_v2  ;;  %v745_v5 = vld [vmem:[#allocation5 + $0x14] ss:$8 sps:$4 sm:$0xff]   ;;  %v747_v6 = vld [vmem:[#allocation5 + $0x10] ss:$8 sps:$4 sm:$0xff]   ;;  %v748_v9 = vld [vmem:[#allocation5 + $0x4] ss:$8 sps:$4 sm:$0xff]  }
  0x35   :  { %160 = vmatprep.subr.bf16.mxu0 %v742_v3  ;;  %v751_v7 = vld [vmem:[#allocation7 + $0x74] ss:$8 sps:$4 sm:$0xff]   ;;  %v753_v8 = vld [vmem:[#allocation7 + $0x70] ss:$8 sps:$4 sm:$0xff]   ;;  %v754_v10 = vld [vmem:[#allocation7 + $0x64] ss:$8 sps:$4 sm:$0xff]  }
  0x36   :  { %403 = vmatprep.subr.bf16.mxu1 %v751_v7  ;;  %v750_v11 = vld [vmem:[#allocation5] ss:$8 sps:$4 sm:$0xff]   ;;  %v83_v12 = vld [vmem:[#allocation2] sm:$0xff]  ;;  %v84_v15 = vld [vmem:[#allocation2 + $0x8] sm:$0xff]  ;;  %v97_v55 = vshrl.u32 %v96_v54, 7  ;;  %s932_s25 = smov [#allocation10]  }
  0x37   :  { %404 = vmatpush1.bf16.msra.mxu1 %v753_v8  ;;  %v756_v13 = vld [vmem:[#allocation7 + $0x60] ss:$8 sps:$4 sm:$0xff]   ;;  %v757_v14 = vld [vmem:[#allocation7 + $0x54] ss:$8 sps:$4 sm:$0xff]   ;;  %v759_v16 = vld [vmem:[#allocation7 + $0x50] ss:$8 sps:$4 sm:$0xff]   ;;  %v85_v17 = vpack.c.bf16 %v84_v15, %v83_v12 }
  0x38   :  { %161 = vmatpush1.bf16.msra.mxu0 %v744_v4  ;;  %405 = vmatprep.subr.bf16.mxu1 %v754_v10  ;;  %v760_v18 = vld [vmem:[#allocation7 + $0x44] ss:$8 sps:$4 sm:$0xff]   ;;  %v762_v19 = vld [vmem:[#allocation7 + $0x40] ss:$8 sps:$4 sm:$0xff]   ;;  %v763_v20 = vld [vmem:[#allocation7 + $0x34] ss:$8 sps:$4 sm:$0xff]  }
  0x39   :  { %162 = vmatprep.subr.bf16.mxu0 %v745_v5  ;;  %v765_v21 = vld [vmem:[#allocation7 + $0x30] ss:$8 sps:$4 sm:$0xff]   ;;  %v766_v22 = vld [vmem:[#allocation7 + $0x24] ss:$8 sps:$4 sm:$0xff]   ;;  %v768_v23 = vld [vmem:[#allocation7 + $0x20] ss:$8 sps:$4 sm:$0xff]  }
  0x3a   :  { %v769_v24 = vld [vmem:[#allocation7 + $0x14] ss:$8 sps:$4 sm:$0xff]   ;;  %v771_v25 = vld [vmem:[#allocation7 + $0x10] ss:$8 sps:$4 sm:$0xff]   ;;  %v772_v26 = vld [vmem:[#allocation7 + $0x4] ss:$8 sps:$4 sm:$0xff]  }
  0x3b   :  { %406 = vmatpush1.bf16.msra.mxu1 %v756_v13  ;;  %v774_v27 = vld [vmem:[#allocation7] ss:$8 sps:$4 sm:$0xff]   ;;  %v775_v28 = vld [vmem:[#allocation7 + $0xf4] ss:$8 sps:$4 sm:$0xff]   ;;  %v777_v29 = vld [vmem:[#allocation7 + $0xf0] ss:$8 sps:$4 sm:$0xff]  }
  0x3c   :  { %163 = vmatpush1.bf16.msra.mxu0 %v747_v6  ;;  %407 = vmatprep.subr.bf16.mxu1 %v757_v14  ;;  %v778_v30 = vld [vmem:[#allocation7 + $0xe4] ss:$8 sps:$4 sm:$0xff]   ;;  %v780_v31 = vld [vmem:[#allocation7 + $0xe0] ss:$8 sps:$4 sm:$0xff]   ;;  %v781_v32 = vld [vmem:[#allocation7 + $0xd4] ss:$8 sps:$4 sm:$0xff]  }
  0x3d   :  { %164 = vmatprep.subr.bf16.mxu0 %v748_v9  ;;  %v783_v33 = vld [vmem:[#allocation7 + $0xd0] ss:$8 sps:$4 sm:$0xff]   ;;  %v784_v34 = vld [vmem:[#allocation7 + $0xc4] ss:$8 sps:$4 sm:$0xff]   ;;  %v786_v35 = vld [vmem:[#allocation7 + $0xc0] ss:$8 sps:$4 sm:$0xff]  }
  0x3e   :  { %v787_v36 = vld [vmem:[#allocation7 + $0xb4] ss:$8 sps:$4 sm:$0xff]   ;;  %v789_v37 = vld [vmem:[#allocation7 + $0xb0] ss:$8 sps:$4 sm:$0xff]   ;;  %v790_v38 = vld [vmem:[#allocation7 + $0xa4] ss:$8 sps:$4 sm:$0xff]  }
  0x3f   :  { %408 = vmatpush1.bf16.msra.mxu1 %v759_v16  ;;  %v792_v39 = vld [vmem:[#allocation7 + $0xa0] ss:$8 sps:$4 sm:$0xff]   ;;  %v793_v40 = vld [vmem:[#allocation7 + $0x94] ss:$8 sps:$4 sm:$0xff]   ;;  %v795_v41 = vld [vmem:[#allocation7 + $0x90] ss:$8 sps:$4 sm:$0xff]  }
  0x40   :  { %165 = vmatpush1.bf16.msra.mxu0 %v750_v11  ;;  %409 = vmatprep.subr.bf16.mxu1 %v760_v18  ;;  %v796_v42 = vld [vmem:[#allocation7 + $0x84] ss:$8 sps:$4 sm:$0xff]   ;;  %v798_v43 = vld [vmem:[#allocation7 + $0x80] ss:$8 sps:$4 sm:$0xff]   ;;  %v799_v44 = vld [vmem:[#allocation8 + $0x78] sm:$0xff]   ;;  %v102_v56 = vsub.s32 1, %v97_v55 }
  0x41   :  { %v800_v45 = vld [vmem:[#allocation8 + $0x38] sm:$0xff]   ;;  %v801_v46 = vld [vmem:[#allocation8 + $0x70] sm:$0xff]   ;;  %707 = vmatprep.subr.bf16.mxu0 %v799_v44  ;;  %v803_v48 = vld [vmem:[#allocation8 + $0x68] sm:$0xff]   ;;  %v98_v57 = vsub.s32 0, %v97_v55  ;;  %s635_s26 = sshll.u32 %s932_s25, 4  ;;  %s636_s26 = int_to_ptr.vmem [resolvable:$true] %s635_s26 }
  0x42   :  { %v802_v47 = vld [vmem:[#allocation8 + $0x30] sm:$0xff]   ;;  %v804_v49 = vld [vmem:[#allocation8 + $0x28] sm:$0xff]   ;;  %v805_v50 = vld [vmem:[#allocation8 + $0x60] sm:$0xff]   ;;  %s895_s27 = scalar_lea.vmem %s636_s26, 256  ;;  %p900_p7 = scmp.lt.s32.totalorder %s636_s26, %s636_s26 }
  0x43   :  { %657 = vmatmul.mubr.msk.bf16.vlgmr.msra.gmra.mxu0 %vm146_vm0, %v85_v17  ;;  %410 = vmatpush1.bf16.msra.mxu1 %v762_v19  ;;  %v806_v51 = vld [vmem:[#allocation8 + $0x20] sm:$0xff]   ;;  %v807_v52 = vld [vmem:[#allocation8 + $0x58] sm:$0xff]   ;;  %v94_v58 = vld [vmem:[%s1011_s2] sm:$0x3]  ;;  %p896_p6 = scmp.ne.s32.totalorder %s636_s26, %s895_s27  ;;  %p901_p8 = scmp.lt.s32.totalorder %s895_s27, %s895_s27 }
  0x44   :  { %411 = vmatprep.subr.bf16.mxu1 %v763_v20  ;;  %708 = vmatpush3.bf16.msra.mxu0 %v800_v45  ;;  %v808_v53 = vld [vmem:[#allocation8 + $0x18] sm:$0xff]   ;;  %v103_v60 = vrot.slane %v94_v58, %v102_v56  ;;  %v99_v61 = vrot.slane %v94_v58, %v98_v57  ;;  %v809_v11 = vld [vmem:[#allocation8 + $0x50] sm:$0xff]   ;;  %v811_v13 = vld [vmem:[#allocation8 + $0x48] sm:$0xff]  }
  0x45   :  { %709 = vmatprep.subr.bf16.mxu0 %v801_v46  ;;  %v810_v12 = vld [vmem:[#allocation8 + $0x10] sm:$0xff]   ;;  %v812_v14 = vld [vmem:[#allocation8 + $0x8] sm:$0xff]   ;;  %v813_v15 = vld [vmem:[#allocation8 + $0x40] sm:$0xff]   ;;  %p902_p9 = por %p901_p8, %p900_p7 }
  0x46   :  { %v814_v16 = vld [vmem:[#allocation8] sm:$0xff]   ;;  %v231_v17 = vld [vmem:[%s1013_s4] sm:$0x3] }
  0x47   :  { %412 = vmatpush1.bf16.msra.mxu1 %v765_v21  ;;  %v240_v19 = vrot.slane %v231_v17, %v102_v56  ;;  %v236_v20 = vrot.slane %v231_v17, %v98_v57  ;;  %p903_p10 = pnand %p902_p9, %p896_p6 }
  0x48   :  { %413 = vmatprep.subr.bf16.mxu1 %v766_v22  ;;  %710 = vmatpush3.bf16.msra.mxu0 %v802_v47 }
  0x49   :  { %711 = vmatprep.subr.bf16.mxu0 %v803_v48 }
  0x4b   :  { %414 = vmatpush1.bf16.msra.mxu1 %v768_v23 }
  0x4c   :  { %415 = vmatprep.subr.bf16.mxu1 %v769_v24  ;;  %712 = vmatpush3.bf16.msra.mxu0 %v804_v49 }
  0x4d   :  { %713 = vmatprep.subr.bf16.mxu0 %v805_v50 }
  0x4f   :  { %416 = vmatpush1.bf16.msra.mxu1 %v771_v25 }
  0x50   :  { %417 = vmatprep.subr.bf16.mxu1 %v772_v26  ;;  %714 = vmatpush3.bf16.msra.mxu0 %v806_v51 }
  0x51   :  { %715 = vmatprep.subr.bf16.mxu0 %v807_v52 }
  0x53   :  { %418 = vmatpush1.bf16.msra.mxu1 %v774_v27 }
  0x54   :  { %419 = vmatprep.subr.bf16.mxu1 %v775_v28  ;;  %716 = vmatpush3.bf16.msra.mxu0 %v808_v53 }
  0x55   :  { %717 = vmatprep.subr.bf16.mxu0 %v809_v11 }
  0x57   :  { %420 = vmatpush2.bf16.msra.mxu1 %v777_v29 }
  0x58   :  { %421 = vmatprep.subr.bf16.mxu1 %v778_v30  ;;  %718 = vmatpush3.bf16.msra.mxu0 %v810_v12 }
  0x59   :  { %719 = vmatprep.subr.bf16.mxu0 %v811_v13 }
  0x5b   :  { %422 = vmatpush2.bf16.msra.mxu1 %v780_v31 }
  0x5c   :  { %423 = vmatprep.subr.bf16.mxu1 %v781_v32  ;;  %720 = vmatpush3.bf16.msra.mxu0 %v812_v14 }
  0x5d   :  { %721 = vmatprep.subr.bf16.mxu0 %v813_v15 }
  0x5f   :  { %424 = vmatpush2.bf16.msra.mxu1 %v783_v33 }
  0x60   :  { %425 = vmatprep.subr.bf16.mxu1 %v784_v34  ;;  %722 = vmatpush3.bf16.msra.mxu0 %v814_v16 }
  0x63   :  { %426 = vmatpush2.bf16.msra.mxu1 %v786_v35  ;;  %v690_v35 = vld [vmem:[%s1015_s6] ss:$0 sm:$0xff] }
  0x64   :  { %427 = vmatprep.subr.bf16.mxu1 %v787_v36 }
  0x67   :  { %428 = vmatpush2.bf16.msra.mxu1 %v789_v37 }
  0x68   :  { %429 = vmatprep.subr.bf16.mxu1 %v790_v38 }
  0x6b   :  { %430 = vmatpush2.bf16.msra.mxu1 %v792_v39 }
  0x6c   :  { %431 = vmatprep.subr.bf16.mxu1 %v793_v40 }
  0x6f   :  { %432 = vmatpush2.bf16.msra.mxu1 %v795_v41 }
  0x70   :  { %433 = vmatprep.subr.bf16.mxu1 %v796_v42 }
  0x73   :  { %434 = vmatpush2.bf16.msra.mxu1 %v798_v43 }
 0x103   :  { %v184_v59 = vpop.f32.mrf.mxu0 }
 0x104   :  { %v185_v2 = vadd.f32 %v184_v59, %v99_v61 }
 0x105   :  { %v186_v62 = vpop.f32.mrf.mxu0 }
 0x106   :  { %v187_v0 = vadd.f32 %v186_v62, %v103_v60  ;;  %v193_v8 = vmax.f32 %v185_v2, 0.0 }
 0x107   :  { %v188_v63 = vpop.f32.mrf.mxu0 }
 0x108   :  { %v189_v1 = vadd.f32 %v188_v63, %v99_v61  ;;  %v194_v6 = vmax.f32 %v187_v0, 0.0 }
 0x109   :  { %v190_v3 = vpop.f32.mrf.mxu0 }
 0x10a   :  { %v191_v4 = vadd.f32 %v190_v3, %v103_v60  ;;  %v195_v5 = vmax.f32 %v189_v1, 0.0 }
 0x10c   :  { %v196_v7 = vmax.f32 %v191_v4, 0.0  ;;  %v197_v10 = vpack.c.bf16 %v195_v5, %v193_v8 }
 0x10e   :  { %v198_v9 = vpack.c.bf16 %v196_v7, %v194_v6 }
 0x110   :  { %435 = vmatprep.mubr.bf16.mxu1 %v198_v9 }
 0x111   :  { %436 = vmatmul.mubr.bf16.vlgmr.msra.gmra.mxu1 %v197_v10 }
 0x1d1   :  { %v437_v18 = vpop.f32.mrf.mxu1 }
 0x1d2   :  { %v438_v25 = vadd.f32 %v437_v18, %v236_v20 }
 0x1d3   :  { %v439_v21 = vpop.f32.mrf.mxu1 }
 0x1d4   :  { %v440_v23 = vadd.f32 %v439_v21, %v240_v19  ;;  %v446_v31 = vmax.f32 %v438_v25, 0.0 }
 0x1d5   :  { %v441_v22 = vpop.f32.mrf.mxu1 }
 0x1d6   :  { %v442_v24 = vadd.f32 %v441_v22, %v236_v20  ;;  %v447_v29 = vmax.f32 %v440_v23, 0.0 }
 0x1d7   :  { %v443_v26 = vpop.f32.mrf.mxu1 }
 0x1d8   :  { %v444_v27 = vadd.f32 %v443_v26, %v240_v19  ;;  %v448_v28 = vmax.f32 %v442_v24, 0.0 }
 0x1da   :  { %v449_v30 = vmax.f32 %v444_v27, 0.0  ;;  %v450_v33 = vpack.c.bf16 %v448_v28, %v446_v31 }
 0x1dc   :  { %v451_v32 = vpack.c.bf16 %v449_v30, %v447_v29 }
 0x1de   :  { %619 = vmatprep.mubr.bf16.mxu0 %v451_v32 }
 0x1df   :  { %620 = vmatmul.mubr.bf16.vlgmr.msra.gmra.mxu0 %v450_v33 }
 0x29f   :  { %v723_v34 = vpop.f32.mrf.mxu0 }
 0x2a1   :  { %v724_v36 = vpop.f32.mrf.mxu0 }
 0x2a2   :  { %v725_v37 = vadd.f32 %v724_v36, %v723_v34 }
 0x2a3   :  { %v726_v38 = vpop.f32.mrf.mxu0 }
 0x2a4   :  { %v622_v39 = vadd.f32 %v725_v37, %v690_v35 }
 0x2a5   :  { %v727_v40 = vpop.f32.mrf.mxu0 }
 0x2a6   :  { %628 = vst [vmem:[#allocation10] sm:$0xff] %v622_v39  ;;  %v728_v41 = vadd.f32 %v727_v40, %v726_v38 }
 0x2a8   :  { %v625_v42 = vadd.f32 %v728_v41, %v690_v35 }
 0x2aa   :  { %629 = vst [vmem:[#allocation10 + $0x8] sm:$0xff] %v625_v42 }
 0x2ab   :  { %906 = shalt.err (!%p903_p10)
}
 0x2ac   :  { %641 = dma.vmem_to_hbm [thread:$0]  %s636_s26, 256, %s1016_s7, [#allocation4], %s925_s29, %s925_s29, %s926_s30  }
 0x2ad   :  { %921 = dma.done.wait [#allocation4], 256  }
 0x2ae   :  { %922 = vsyncadd [#allocation4], 4294967040 }
 0x2af   :  { %645 = vsyncpa [#allocation3], 1 }
 0x2b0   :  { %646 = vsyncpa [#allocation6], 1 }
 0x2b1   :  { %647 = vsyncpa [#allocation9], 1 }
 0x2b2   :  { %648 = vsyncpa [#allocation4], 1 }

</bundles_post_ra>
